<compile_context>
chip_gen: v6e
topology: v6e:2x2x1
jax: 0.10.0
libtpu: 0.0.40
codegen_flags: <defaults>
</compile_context>

<pallas_src>
import functools

import jax
import jax.numpy as jnp
from jax.experimental import pallas as pl
from jax.experimental.pallas import tpu as pltpu


def _nearest_embed_kernel(x_ref, e_kd_ref, e_dk_ref, en_ref, q_ref, idx_ref, *,
                          k_pad, distance_dtype):
    # x_ref   : (1, D, TO)    lane-dense input slab for one (batch, O-tile)
    # e_kd_ref: (K_pad, D)    codebook, one entry per row (resident, f32)
    # e_dk_ref: (D, K_pad)    codebook, native layout (resident, f32)
    # en_ref  : (K_pad, 1)    precomputed ||e_k||^2, +inf on padded rows (resident)
    # q_ref   : (1, D, TO)    quantized output
    # idx_ref : (1, 1, TO)    argmin codebook indices (int32, lane-dense)
    x = x_ref[0]                     # (D, TO) f32
    e_kd = e_kd_ref[...]             # (K_pad, D) f32
    e_dk = e_dk_ref[...]             # (D, K_pad) f32
    en = en_ref[...]                 # (K_pad, 1) f32 (+inf on padded rows)
    to = x.shape[1]

    # Squared distance up to a per-column constant:
    #   score[k, o] = ||e_k||^2 - 2 * e_k . x_o       (cross term on the MXU)
    # Padded codebook rows already carry ||e||^2 = +inf -> never selected, so no
    # explicit (K_pad, TO) mask/select is needed in the hot path.
    cross = jnp.dot(e_kd.astype(distance_dtype), x.astype(distance_dtype),
                    preferred_element_type=jnp.float32)                 # (K_pad, TO)
    score = en - 2.0 * cross

    k_ids = jax.lax.broadcasted_iota(jnp.int32, (k_pad, to), 0)

    # argmin over the codebook axis, ties broken to the lowest index
    # (matches torch.min / torch.argmin first-occurrence behaviour).
    min_s = jnp.min(score, axis=0, keepdims=True)                       # (1, TO)
    idx = jnp.min(jnp.where(score == min_s, k_ids, k_pad),
                  axis=0, keepdims=True)                                # (1, TO) int32

    # Gather the selected codebook columns with an exact f32 one-hot MXU matmul.
    onehot = (k_ids == idx).astype(jnp.float32)                         # (K_pad, TO)
    q = jnp.dot(e_dk, onehot, preferred_element_type=jnp.float32)       # (D, TO)

    q_ref[...] = q[None].astype(q_ref.dtype)
    idx_ref[...] = idx[None].astype(jnp.int32)


def nearest_embed(x, emb, *, tile_o=256, distance_dtype=jnp.float32):
    """Forward pass of NearestEmbed (share_codebook=True).

    x   : (B, D, O) float
    emb : (D, K)    float
    returns (quantized (B, D, O) float32, argmin (B, O) int32)

    distance_dtype=jnp.bfloat16 runs the distance matmul in bf16 (recommended on
    v5e/v6e); returned values are still exact codebook entries, only argmin on
    numerical near-ties can differ from fp32.
    """
    if x.shape[1] != emb.shape[0]:
        raise RuntimeError(
            'invalid argument: input.size(1) ({}) must be equal to emb.size(0) ({})'
            .format(x.shape[1], emb.shape[0]))
    # TODO(synk): share_codebook=False branch (per-latent codebooks) not implemented.

    B, D, O = x.shape
    K = emb.shape[1]

    x = x.astype(jnp.float32)
    emb = emb.astype(jnp.float32)

    # O tile on the lane axis: a multiple of 128, or the whole (small) O.
    if O >= 128:
        tile_o = max(128, (min(int(tile_o), O) // 128) * 128)
        o_pad = pl.cdiv(O, tile_o) * tile_o
    else:
        tile_o = O
        o_pad = O
    if o_pad != O:
        x = jnp.pad(x, ((0, 0), (0, 0), (0, o_pad - O)))

    # Pad the codebook to a multiple of 128 entries (MXU-aligned one-hot gather).
    # TODO(synk): for tiny K (< ~64) a VPU select chain would beat the MXU gather.
    k_pad = pl.cdiv(K, 128) * 128
    e_dk = jnp.pad(emb, ((0, 0), (0, k_pad - K))) if k_pad != K else emb   # (D, K_pad)
    e_kd = e_dk.T                                                           # (K_pad, D)

    # Precompute ||e_k||^2 once (tiny); padded rows get +inf so the kernel never
    # needs to mask them and never recomputes norms per grid step.
    en = jnp.sum(e_kd * e_kd, axis=1, keepdims=True)                        # (K_pad, 1)
    if k_pad != K:
        en = jnp.where(jnp.arange(k_pad)[:, None] < K, en, jnp.inf)

    grid = (B, o_pad // tile_o)
    kernel = functools.partial(
        _nearest_embed_kernel, k_pad=k_pad, distance_dtype=distance_dtype)

    # VMEM note: default scoped VMEM is ample at these tile sizes; raise
    # vmem_limit_bytes in CompilerParams if tile_o / K are pushed much larger.
    q_pad, idx_pad = pl.pallas_call(
        kernel,
        grid=grid,
        in_specs=[
            # x: one batch row, full D, lane-dense O tile.
            pl.BlockSpec((1, D, tile_o), lambda b, o: (b, 0, o)),
            # Codebook (both layouts) + norms: constant index_map -> DMA'd once,
            # stay resident across all grid steps.
            pl.BlockSpec((k_pad, D), lambda b, o: (0, 0)),
            pl.BlockSpec((D, k_pad), lambda b, o: (0, 0)),
            pl.BlockSpec((k_pad, 1), lambda b, o: (0, 0)),
        ],
        out_specs=[
            pl.BlockSpec((1, D, tile_o), lambda b, o: (b, 0, o)),
            pl.BlockSpec((1, 1, tile_o), lambda b, o: (b, 0, o)),
        ],
        out_shape=(
            jax.ShapeDtypeStruct((B, D, o_pad), jnp.float32),
            jax.ShapeDtypeStruct((B, 1, o_pad), jnp.int32),
        ),
        compiler_params=pltpu.CompilerParams(
            dimension_semantics=("parallel", "parallel")),
    )(x, e_kd, e_dk, en)

    quantized = q_pad[:, :, :O]
    argmin = idx_pad[:, 0, :O]
    return quantized, argmin


class NearestEmbed:
    """JAX mirror of the PyTorch NearestEmbed module (forward only)."""

    def __init__(self, num_embeddings, embeddings_dim, share_codebook=True, key=None):
        if key is None:
            key = jax.random.PRNGKey(0)
        # torch.rand(embeddings_dim, num_embeddings) -> U[0, 1)
        self.weight = jax.random.uniform(
            key, (embeddings_dim, num_embeddings), dtype=jnp.float32)
        self.share_codebook = share_codebook

    def __call__(self, x, weight_sg=False):
        # weight_sg only affects autodiff (detach); forward values are identical.
        w = jax.lax.stop_gradient(self.weight) if weight_sg else self.weight
        return nearest_embed(x, w)


if __name__ == "__main__":
    key = jax.random.PRNGKey(0)
    k_x, k_w = jax.random.split(key)

    B, D, O, K = 2, 32, 512, 96            # x: (batch, emb_dim, num_latents)
    x = jax.random.normal(k_x, (B, D, O), dtype=jnp.float32)

    module = NearestEmbed(num_embeddings=K, embeddings_dim=D, key=k_w)
    quantized, argmin = module(x)
    quantized, argmin = jax.block_until_ready((quantized, argmin))

    assert quantized.shape == (B, D, O) and quantized.dtype == jnp.float32
    assert argmin.shape == (B, O) and argmin.dtype == jnp.int32

    # Plain-JAX reference (mirrors the PyTorch forward).
    w = module.weight
    dist_ref = jnp.linalg.norm(
        x[:, :, :, None] - w[None, :, None, :], axis=1)               # (B, O, K)
    idx_ref = jnp.argmin(dist_ref, axis=-1).astype(jnp.int32)         # (B, O)

    # Quantized rows must be (exact) codebook columns at the kernel's own argmin.
    q_expect = jnp.transpose(w[:, argmin], (1, 0, 2))                 # (B, D, O)
    assert jnp.allclose(quantized, q_expect, atol=1e-6, rtol=1e-6)

    # Argmin must agree with the reference except at numerical near-ties between
    # the top-2 codes (fp reduction order can legitimately differ there).
    d_sorted = jnp.sort(dist_ref, axis=-1)
    near_tie = (d_sorted[..., 1] - d_sorted[..., 0]) < 1e-4
    assert bool(jnp.all((argmin == idx_ref) | near_tie))

    # bf16 distance path (the v5e/v6e fast path): values are still exact codebook
    # entries for its own argmin; only near-tie indices may move.
    q_bf16, idx_bf16 = nearest_embed(x, w, distance_dtype=jnp.bfloat16)
    q_bf16, idx_bf16 = jax.block_until_ready((q_bf16, idx_bf16))
    assert jnp.allclose(q_bf16, jnp.transpose(w[:, idx_bf16], (1, 0, 2)),
                        atol=1e-6, rtol=1e-6)

    print("KERNEL_OK")
</pallas_src>

<mosaic_0001>
module attributes {stable_mosaic.version = 11 : i64} {
  func.func @_nearest_embed_kernel(%arg0: i32, %arg1: i32, %arg2: memref<1x32x256xf32, #tpu.memory_space<vmem>>, %arg3: memref<128x32xf32, #tpu.memory_space<vmem>>, %arg4: memref<32x128xf32, #tpu.memory_space<vmem>>, %arg5: memref<128x1xf32, #tpu.memory_space<vmem>>, %arg6: memref<1x32x256xf32, #tpu.memory_space<vmem>>, %arg7: memref<1x1x256xi32, #tpu.memory_space<vmem>>) attributes {dimension_semantics = [#tpu.dimension_semantics<parallel>, #tpu.dimension_semantics<parallel>], iteration_bounds = array<i64: 2, 2>, scalar_prefetch = 0 : i64, scratch_operands = 0 : i64, tpu.core_type = #tpu.core_type<tc>, window_params = [{transform_indices = @transform_0, window_bounds = array<i64: 1, 32, 256>}, {pipeline_mode = #tpu.pipeline_mode<synchronous>, transform_indices = @transform_1, window_bounds = array<i64: 128, 32>}, {pipeline_mode = #tpu.pipeline_mode<synchronous>, transform_indices = @transform_2, window_bounds = array<i64: 32, 128>}, {pipeline_mode = #tpu.pipeline_mode<synchronous>, transform_indices = @transform_3, window_bounds = array<i64: 128, 1>}, {transform_indices = @transform_4, window_bounds = array<i64: 1, 32, 256>}, {transform_indices = @transform_5, window_bounds = array<i64: 1, 1, 256>}]} {
    %c0 = arith.constant 0 : index
    %c0_0 = arith.constant 0 : index
    %c0_1 = arith.constant 0 : index
    %0 = vector.load %arg2[%c0, %c0_0, %c0_1] : memref<1x32x256xf32, #tpu.memory_space<vmem>>, vector<1x32x256xf32>
    %1 = vector.shape_cast %0 : vector<1x32x256xf32> to vector<32x256xf32>
    %c0_2 = arith.constant 0 : index
    %c0_3 = arith.constant 0 : index
    %2 = vector.load %arg3[%c0_2, %c0_3] : memref<128x32xf32, #tpu.memory_space<vmem>>, vector<128x32xf32>
    %c0_4 = arith.constant 0 : index
    %c0_5 = arith.constant 0 : index
    %3 = vector.load %arg4[%c0_4, %c0_5] : memref<32x128xf32, #tpu.memory_space<vmem>>, vector<32x128xf32>
    %c0_6 = arith.constant 0 : index
    %c0_7 = arith.constant 0 : index
    %4 = vector.load %arg5[%c0_6, %c0_7] : memref<128x1xf32, #tpu.memory_space<vmem>>, vector<128x1xf32>
    %cst = arith.constant dense<0.000000e+00> : vector<128x256xf32>
    %5 = tpu.matmul %2, %1, %cst {dimension_numbers = #tpu.dot_dimension_numbers<[1], [0], [0], [1], [0, 0, 1, 1], [], []>} : vector<128x32xf32>, vector<32x256xf32>, vector<128x256xf32> -> vector<128x256xf32>
    %cst_8 = arith.constant 2.000000e+00 : f32
    %6 = vector.broadcast %cst_8 : f32 to vector<128x256xf32>
    %7 = arith.mulf %6, %5 : vector<128x256xf32>
    %8 = vector.broadcast %4 : vector<128x1xf32> to vector<128x256xf32>
    %9 = arith.subf %8, %7 : vector<128x256xf32>
    %10 = tpu.iota {dimensions = array<i32: 0>} : vector<128x256xi32>
    %cst_9 = arith.constant dense<0x7F800000> : vector<256xf32>
    %11 = vector.multi_reduction <minimumf>, %9, %cst_9 [0] : vector<128x256xf32> to vector<256xf32>
    %12 = vector.shape_cast %11 : vector<256xf32> to vector<1x256xf32>
    %13 = vector.broadcast %12 : vector<1x256xf32> to vector<128x256xf32>
    %14 = arith.cmpf oeq, %9, %13 : vector<128x256xf32>
    %c128_i32 = arith.constant 128 : i32
    %15 = vector.broadcast %c128_i32 : i32 to vector<128x256xi32>
    %16 = arith.select %14, %10, %15 : vector<128x256xi1>, vector<128x256xi32>
    %cst_10 = arith.constant dense<2147483647> : vector<256xi32>
    %17 = vector.multi_reduction <minsi>, %16, %cst_10 [0] : vector<128x256xi32> to vector<256xi32>
    %18 = vector.shape_cast %17 : vector<256xi32> to vector<1x256xi32>
    %19 = vector.broadcast %18 : vector<1x256xi32> to vector<128x256xi32>
    %20 = arith.cmpi eq, %10, %19 : vector<128x256xi32>
    %21 = arith.extui %20 : vector<128x256xi1> to vector<128x256xi32>
    %22 = arith.sitofp %21 : vector<128x256xi32> to vector<128x256xf32>
    %cst_11 = arith.constant dense<0.000000e+00> : vector<32x256xf32>
    %23 = tpu.matmul %3, %22, %cst_11 {dimension_numbers = #tpu.dot_dimension_numbers<[1], [0], [0], [1], [0, 0, 1, 1], [], []>} : vector<32x128xf32>, vector<128x256xf32>, vector<32x256xf32> -> vector<32x256xf32>
    %24 = vector.shape_cast %23 : vector<32x256xf32> to vector<1x32x256xf32>
    %c0_12 = arith.constant 0 : index
    %c0_13 = arith.constant 0 : index
    %c0_14 = arith.constant 0 : index
    %25 = vector.load %arg6[%c0_12, %c0_13, %c0_14] : memref<1x32x256xf32, #tpu.memory_space<vmem>>, vector<1x32x256xf32>
    tpu.vector_store %arg6[%c0_12, %c0_13, %c0_14], %24 {strides = array<i32>} : memref<1x32x256xf32, #tpu.memory_space<vmem>>, vector<1x32x256xf32>,
    %26 = vector.shape_cast %18 : vector<1x256xi32> to vector<1x1x256xi32>
    %c0_15 = arith.constant 0 : index
    %c0_16 = arith.constant 0 : index
    %c0_17 = arith.constant 0 : index
    %27 = vector.load %arg7[%c0_15, %c0_16, %c0_17] : memref<1x1x256xi32, #tpu.memory_space<vmem>>, vector<1x1x256xi32>
    tpu.vector_store %arg7[%c0_15, %c0_16, %c0_17], %26 {strides = array<i32>} : memref<1x1x256xi32, #tpu.memory_space<vmem>>, vector<1x1x256xi32>,
    return
  }
  func.func @transform_0(%arg0: i32, %arg1: i32) -> (i32, i32, i32) {
    %c0_i32 = arith.constant 0 : i32
    %c0_i32_0 = arith.constant 0 : i32
    return %arg0, %c0_i32, %arg1 : i32, i32, i32
  }
  func.func @transform_1(%arg0: i32, %arg1: i32) -> (i32, i32) {
    %c0_i32 = arith.constant 0 : i32
    %c0_i32_0 = arith.constant 0 : i32
    %c0_i32_1 = arith.constant 0 : i32
    return %c0_i32, %c0_i32_0 : i32, i32
  }
  func.func @transform_2(%arg0: i32, %arg1: i32) -> (i32, i32) {
    %c0_i32 = arith.constant 0 : i32
    %c0_i32_0 = arith.constant 0 : i32
    %c0_i32_1 = arith.constant 0 : i32
    return %c0_i32, %c0_i32_0 : i32, i32
  }
  func.func @transform_3(%arg0: i32, %arg1: i32) -> (i32, i32) {
    %c0_i32 = arith.constant 0 : i32
    %c0_i32_0 = arith.constant 0 : i32
    %c0_i32_1 = arith.constant 0 : i32
    return %c0_i32, %c0_i32_0 : i32, i32
  }
  func.func @transform_4(%arg0: i32, %arg1: i32) -> (i32, i32, i32) {
    %c0_i32 = arith.constant 0 : i32
    %c0_i32_0 = arith.constant 0 : i32
    return %arg0, %c0_i32, %arg1 : i32, i32, i32
  }
  func.func @transform_5(%arg0: i32, %arg1: i32) -> (i32, i32, i32) {
    %c0_i32 = arith.constant 0 : i32
    %c0_i32_0 = arith.constant 0 : i32
    return %arg0, %c0_i32, %arg1 : i32, i32, i32
  }
}

</mosaic_0001>

<bundles_post_ra>
// kernel: tpu_custom_call.1
= control target key start
LH: loop header
LB: loop body
LE: loop exit
PB: predicated region body
PF: predicated region fallthrough
CT: control target
= control target key end

     0   :  { %s2329_s0 = inlined_call_operand.vmem [shape: f32[2,32,512], index: 0, kind: input, shape index: {}]   ;;  %s2330_s1 = inlined_call_operand.vmem [shape: f32[128,32], index: 1, kind: input, shape index: {}]   ;;  %s2331_s2 = inlined_call_operand.vmem [shape: f32[32,128], index: 2, kind: input, shape index: {}]   ;;  %s2332_s3 = inlined_call_operand.vmem [shape: f32[128,1], index: 3, kind: input, shape index: {}]   ;;  %s2333_s4 = inlined_call_operand.hbm [shape: f32[2,32,512], index: 4, kind: output, shape index: {0}]   ;;  %s2334_s5 = inlined_call_operand.hbm [shape: s32[2,1,512], index: 5, kind: output, shape index: {1}]  }
   0x1   :  { %2336 = sst [smem:[#allocation9_spill]] %s2329_s0 }
   0x2   :  { %2337 = sst [smem:[#allocation10_spill]] %s2330_s1 }
   0x3   :  { %2338 = sst [smem:[#allocation11_spill]] %s2331_s2 }
   0x4   :  { %11 = vsyncpa [#allocation4], 0 }
   0x5   :  { %13 = vsyncpa [#allocation4 + $0x1], 0 }
   0x6   :  { %14 = vsyncpa [#allocation6], 0 }
   0x7   :  { %16 = vsyncpa [#allocation6 + $0x1], 0  ;;  %s1610_s18 = smov 0   ;;  %s1612_s19 = smov 0  }
   0x8   :  { %s1614_s20 = smov 0   ;;  %s1616_s21 = smov 0  }
   0x9   :  { %s1618_s22 = smov 0   ;;  %s1620_s23 = smov 0  }
   0xa   :  { %s1622_s24 = smov 0   ;;  %s1624_s25 = smov 0  }
   0xb LB: > { %s1260_s26 = sadd.s32 4294967295, %s1569_s25   ;;  %s1261_s27 = sadd.s32 4294967294, %s1569_s25   ;;  %s1569_s25 = sphi %s1624_s25, %s22_s25   ;;  %s1565_s24 = sphi %s1622_s24, %s2352_s24   ;;  %s1561_s23 = sphi %s1620_s23, %s2351_s23   ;;  %s1557_s22 = sphi %s1618_s22, %s2350_s22   ;;  %s1553_s21 = sphi %s1616_s21, %s2349_s21   ;;  %s1549_s20 = sphi %s1614_s20, %s2348_s20   ;;  %s1545_s19 = sphi %s1612_s19, %s2347_s19   ;;  %s1541_s18 = sphi %s1610_s18, %s2346_s18  }
   0xc   : > { %s31_s28 = sadd.s32 1, %s1561_s23  ;;  %s34_s29 = sadd.s32 1, %s1565_s24 }
   0xd   : > { %p32_p0 = scmp.ge.s32.totalorder %s31_s28, 2  ;;  %p50_p1 = scmp.ne.s32.totalorder %s1549_s20, %s1545_s19 }
   0xe   : > { %p51_p2 = scmp.eq.s32.totalorder %s1569_s25, 0  ;;  %p145_p5 = scmp.eq.s32.totalorder %s1260_s26, 3 }
   0xf   : > { %s2354_s28 = smov (%p32_p0, %s31_s28), 0  ;;  %s2356_s29 = smov (!%p32_p0, %s34_s29), %s1565_s24 }
  0x10   : > { %s39_s30 = ssub.s32 %s1561_s23, %s2354_s28  ;;  %p1662_p3 = por %p51_p2, %p50_p1 }
  0x11   : > { %p36_p4 = scmp.ge.s32.totalorder %s2356_s29, 2  ;;  %p150_p6 = scmp.ne.s32.totalorder %s1545_s19, %s1541_s18 }
  0x12   : > { %p151_p7 = scmp.eq.s32.totalorder %s1261_s27, 3  ;;  %p1670_p8 = por %p145_p5, %p50_p1 }
  0x13   : > { %s2358_s29 = smov (%p36_p4, %s2356_s29), 0  ;;  %s43_s11 = sadd.s32 1, %s1549_s20 }
  0x14   : > { %p1674_p9 = por %p151_p7, %p150_p6  ;;  %s38_s9 = ssub.s32 %s1565_s24, %s2358_s29 }
  0x15   : > { %s40_s10 = sor.u32 %s39_s30, %s38_s9  ;;  %p1263_p11 = scmp.ge.s32.totalorder %s1569_s25, 4 }
  0x16   : > { %p41_p10 = scmp.eq.s32.totalorder %s40_s10, 0 }
  0x17   : > { %204 = sbr.rel (%p1263_p11) target bundleno = 42 (0x2a), region = 28 }
  0x18   : > { %s1682_s12 = scalar_select %p41_p10, %s1549_s20, %s43_s11  }
  0x1c   : > { %207 = sbr.rel (!%p1662_p3) target bundleno = 42 (0x2a), region = 32  ;;  %s209_s13 = sand.u32 (%p1662_p3), 1, %s1549_s20  }
  0x1d   : > { %s1265_s14 = sshll.u32 (%p1662_p3), %s1561_s23, 1  ;;  %s1264_s15 = sshll.u32 (%p1662_p3), %s209_s13, 6 }
  0x1e   : > { %s1266_s16 = sshll.u32 (%p1662_p3), %s1565_s24, 4  ;;  %s2342_s0 = sld [smem:[#allocation9_spill]] (%p1662_p3) }
  0x1f   : > { %s214_s17 = sadd.s32 (%p1662_p3), %s1266_s16, %s1265_s14  ;;  %s211_s10 = scalar_lea.vmem (%p1662_p3), [#allocation2], %s1264_s15 }
  0x20   : > { %s1267_s26 = sshll.u32 (%p1662_p3), %s214_s17, 3 }
  0x24   : > { %s216_s9 = scalar_lea.vmem %s2342_s0, %s1267_s26 }
  0x25   : > { %v229_v0 = vld [vmem:[%s216_s9] sm:$0xff]  ;;  %v231_v1 = vld [vmem:[%s216_s9 + $0x8] sm:$0xff] }
  0x26   : > { %v233_v2 = vld [vmem:[%s216_s9 + $0x20] sm:$0xff]  ;;  %230 = vst [vmem:[%s211_s10] sm:$0xff] %v229_v0  ;;  %232 = vst [vmem:[%s211_s10 + $0x8] sm:$0xff] %v231_v1  ;;  %v235_v3 = vld [vmem:[%s216_s9 + $0x28] sm:$0xff] }
  0x27   : > { %234 = vst [vmem:[%s211_s10 + $0x10] sm:$0xff] %v233_v2  ;;  %v237_v4 = vld [vmem:[%s216_s9 + $0x40] sm:$0xff]  ;;  %v239_v5 = vld [vmem:[%s216_s9 + $0x48] sm:$0xff]  ;;  %236 = vst [vmem:[%s211_s10 + $0x18] sm:$0xff] %v235_v3 }
  0x28   : > { %238 = vst [vmem:[%s211_s10 + $0x20] sm:$0xff] %v237_v4  ;;  %240 = vst [vmem:[%s211_s10 + $0x28] sm:$0xff] %v239_v5  ;;  %v241_v6 = vld [vmem:[%s216_s9 + $0x60] sm:$0xff]  ;;  %v243_v7 = vld [vmem:[%s216_s9 + $0x68] sm:$0xff] }
  0x29   : > { %242 = vst [vmem:[%s211_s10 + $0x30] sm:$0xff] %v241_v6  ;;  %244 = vst [vmem:[%s211_s10 + $0x38] sm:$0xff] %v243_v7 }
  0x2a PF: > { %p1268_p12 = scmp.ge.s32.totalorder %s1569_s25, 1  ;;  %p249_p13 = scmp.lt.s32.totalorder %s1569_s25, 5 }
  0x2c   : > { %p250_p0 = pnand %p1268_p12, %p249_p13 }
  0x2d   : > { %s1696_s6 = sand.u32 (!%p250_p0), 1, %s1545_s19   ;;  %s2343_s1 = sld [smem:[#allocation10_spill]] (!%p250_p0) }
  0x2e   : > { %253 = sbr.rel (%p250_p0) target bundleno = 639 (0x27f), region = 55  ;;  %s2335_s11 = sshll.u32 (!%p250_p0), %s1696_s6, 6 }
  0x2f   : > { %s258_s13 = scalar_lea.vmem (!%p250_p0), [#allocation2], %s2335_s11  ;;  %s1271_s26 = sshll.u32 (!%p250_p0), %s1696_s6, 1 }
  0x30   : > { %s2163_s27 = scalar_lea.vmem (!%p250_p0), [#allocation5], %s1271_s26  ;;  %s2344_s2 = sld [smem:[#allocation11_spill]] (!%p250_p0) }
  0x31   : > { %s1354_s26 = sshll.u32 (!%p250_p0), %s1553_s21, 1  ;;  %s1358_s30 = sshll.u32 (!%p250_p0), %s1557_s22, 2 }
  0x32   : > { %s1139_s9 = sadd.s32 (!%p250_p0), %s1358_s30, %s1354_s26  ;;  %s1143_s10 = sshll.u32 (!%p250_p0), %s2163_s27, 4  ;;  %s1144_s10 = int_to_ptr.vmem [resolvable:$true] %s1143_s10 }
  0x33   : > { %v1571_v8 = vmov 0.0   ;;  %v1572_v9 = vmov 0   ;;  %v298_v10 = vld [vmem:[%s258_s13 + $0x38] sm:$0xff]  ;;  %v297_v11 = vld [vmem:[%s258_s13 + $0x30] sm:$0xff]  ;;  %v296_v12 = vld [vmem:[%s258_s13 + $0x28] sm:$0xff]  ;;  %vm335_vm0 = vcmask 261120  }
  0x34   : > { %448 = vmatprep.mubr.f32.mxu0 %v1571_v8  ;;  %1050 = vmatprep.mubr.f32.mxu1 %v1571_v8  ;;  %v295_v13 = vld [vmem:[%s258_s13 + $0x20] sm:$0xff]  ;;  %v294_v14 = vld [vmem:[%s258_s13 + $0x18] sm:$0xff]  ;;  %v293_v15 = vld [vmem:[%s258_s13 + $0x10] sm:$0xff]  ;;  %s1109_s15 = scalar_lea.sflag [#allocation6], %s1696_s6  ;;  %s1575_s16 = smov [#allocation5]  }
  0x35   : > { %1445 = vset.pattern.permute.xlu0 %v1572_v9  ;;  %1446 = vset.pattern.permute.xlu1 %v1572_v9  ;;  %v292_v16 = vld [vmem:[%s258_s13 + $0x8] sm:$0xff]  ;;  %v291_v17 = vld [vmem:[%s258_s13] sm:$0xff]  ;;  %v321_v19 = vld [vmem:[%s2332_s3 + $0x10] sm:$0xff]  ;;  %s1359_s13 = sshll.u32 %s1139_s9, 4  ;;  %s1451_s17 = sshll.u32 %s1575_s16, 4  ;;  %s1452_s17 = int_to_ptr.vmem [resolvable:$false] %s1451_s17 }
  0x36   : > { %408 = vmatprep.subr.mxu0 %v298_v10  ;;  %v319_v18 = vld [vmem:[%s2332_s3] sm:$0xff]  ;;  %v320_v21 = vld [vmem:[%s2332_s3 + $0x8] sm:$0xff]  ;;  %589 = vperm.xlu1 %1446, %v321_v19   ;;  %v322_v22 = vld [vmem:[%s2332_s3 + $0x18] sm:$0xff]  ;;  %s1141_s14 = scalar_lea.hbm %s2334_s5, %s1359_s13  ;;  %p1454_p4 = scmp.lt.s32.totalorder %s1144_s10, %s1452_s17 }
  0x37   : > { %409 = vmatpush1.msra.mxu0 %v297_v11  ;;  %v299_v20 = vld [vmem:[%s2343_s1] sm:$0xff]  ;;  %579 = vperm.xlu0 %1445, %v319_v18   ;;  %v300_v23 = vld [vmem:[%s2343_s1 + $0x8] sm:$0xff]  ;;  %v301_v26 = vld [vmem:[%s2343_s1 + $0x10] sm:$0xff] }
  0x38   : > { %410 = vmatprep.subr.mxu0 %v296_v12  ;;  %v323_v24 = vld [vmem:[%s2332_s3 + $0x20] sm:$0xff]  ;;  %v324_v25 = vld [vmem:[%s2332_s3 + $0x28] sm:$0xff]  ;;  %v325_v27 = vld [vmem:[%s2332_s3 + $0x30] sm:$0xff] }
  0x39   : > { %411 = vmatpush1.msra.mxu0 %v295_v13  ;;  %v326_v28 = vld [vmem:[%s2332_s3 + $0x38] sm:$0xff]  ;;  %v327_v30 = vld [vmem:[%s2332_s3 + $0x40] sm:$0xff]  ;;  %v328_v31 = vld [vmem:[%s2332_s3 + $0x48] sm:$0xff] }
  0x3a   : > { %412 = vmatprep.subr.mxu0 %v294_v14  ;;  %594 = vperm.xlu1 %1446, %v322_v22   ;;  %v302_v29 = vld [vmem:[%s2343_s1 + $0x18] sm:$0xff]  ;;  %v303_v32 = vld [vmem:[%s2343_s1 + $0x20] sm:$0xff]  ;;  %v329_v33 = vld [vmem:[%s2332_s3 + $0x50] sm:$0xff] }
  0x3b   : > { %413 = vmatpush1.msra.mxu0 %v293_v15  ;;  %584 = vperm.xlu0 %1445, %v320_v21   ;;  %v330_v34 = vld [vmem:[%s2332_s3 + $0x58] sm:$0xff]  ;;  %v304_v35 = vld [vmem:[%s2343_s1 + $0x28] sm:$0xff]  ;;  %v331_v36 = vld [vmem:[%s2332_s3 + $0x60] sm:$0xff] }
  0x3c   : > { %414 = vmatprep.subr.mxu0 %v292_v16  ;;  %v332_v37 = vld [vmem:[%s2332_s3 + $0x68] sm:$0xff]  ;;  %v305_v38 = vld [vmem:[%s2343_s1 + $0x30] sm:$0xff]  ;;  %v334_v40 = vld [vmem:[%s2332_s3 + $0x78] sm:$0xff] }
  0x3d   : > { %415 = vmatpush1.msra.mxu0 %v291_v17  ;;  %v333_v39 = vld [vmem:[%s2332_s3 + $0x70] sm:$0xff]  ;;  %v306_v41 = vld [vmem:[%s2343_s1 + $0x38] sm:$0xff]  ;;  %v307_v42 = vld [vmem:[%s2343_s1 + $0x40] sm:$0xff] }
  0x3e   : > { %1272 = vmatmul.mubr.msk.f32.vlgmr.msra.gmra.mxu0 %vm335_vm0, %v299_v20  ;;  %604 = vperm.xlu1 %1446, %v324_v25   ;;  %v308_v43 = vld [vmem:[%s2343_s1 + $0x48] sm:$0xff]  ;;  %v309_v44 = vld [vmem:[%s2343_s1 + $0x50] sm:$0xff]  ;;  %v310_v45 = vld [vmem:[%s2343_s1 + $0x58] sm:$0xff] }
  0x3f   : > { %454 = vmatprep.mubr.f32.mxu0 %v1571_v8  ;;  %599 = vperm.xlu0 %1445, %v323_v24   ;;  %v311_v46 = vld [vmem:[%s2343_s1 + $0x60] sm:$0xff]  ;;  %v312_v47 = vld [vmem:[%s2343_s1 + $0x68] sm:$0xff]  ;;  %v313_v48 = vld [vmem:[%s2343_s1 + $0x70] sm:$0xff] }
  0x40   : > { %v314_v49 = vld [vmem:[%s2343_s1 + $0x78] sm:$0xff]  ;;  %s1447_s1 = scalar_lea.vmem %s1144_s10, 32 }
  0x41   : > { %p1448_p1 = scmp.ne.s32.totalorder %s1144_s10, %s1447_s1 }
  0x42   : > { %1273 = vmatmul.mubr.msk.f32.gmra.mxu0 %vm335_vm0, %v300_v23  ;;  %614 = vperm.xlu1 %1446, %v326_v28  }
  0x43   : > { %460 = vmatprep.mubr.f32.mxu0 %v1571_v8  ;;  %609 = vperm.xlu0 %1445, %v325_v27   ;;  %p1449_p2 = pnand %p1448_p1, %p1670_p8 }
  0x45   : > { %p1450_p3 = pneg %p1449_p2 }
  0x46   : > { %1274 = vmatmul.mubr.msk.f32.gmra.mxu0 %vm335_vm0, %v301_v26  ;;  %624 = vperm.xlu1 %1446, %v328_v31  }
  0x47   : > { %466 = vmatprep.mubr.f32.mxu0 %v1571_v8  ;;  %619 = vperm.xlu0 %1445, %v327_v30  }
  0x4a   : > { %1275 = vmatmul.mubr.msk.f32.gmra.mxu0 %vm335_vm0, %v302_v29  ;;  %634 = vperm.xlu1 %1446, %v330_v34  }
  0x4b   : > { %472 = vmatprep.mubr.f32.mxu0 %v1571_v8  ;;  %629 = vperm.xlu0 %1445, %v329_v33  }
  0x4e   : > { %1276 = vmatmul.mubr.msk.f32.gmra.mxu0 %vm335_vm0, %v303_v32  ;;  %644 = vperm.xlu1 %1446, %v332_v37  }
  0x4f   : > { %478 = vmatprep.mubr.f32.mxu0 %v1571_v8  ;;  %639 = vperm.xlu0 %1445, %v331_v36  }
  0x52   : > { %1277 = vmatmul.mubr.msk.f32.gmra.mxu0 %vm335_vm0, %v304_v35  ;;  %654 = vperm.xlu1 %1446, %v334_v40  }
  0x53   : > { %484 = vmatprep.mubr.f32.mxu0 %v1571_v8  ;;  %649 = vperm.xlu0 %1445, %v333_v39  }
  0x56   : > { %1278 = vmatmul.mubr.msk.f32.gmra.mxu0 %vm335_vm0, %v305_v38 }
  0x57   : > { %490 = vmatprep.mubr.f32.mxu0 %v1571_v8 }
  0x5a   : > { %1279 = vmatmul.mubr.msk.f32.gmra.mxu0 %vm335_vm0, %v306_v41 }
  0x5b   : > { %496 = vmatprep.mubr.f32.mxu0 %v1571_v8 }
  0x5e   : > { %1280 = vmatmul.mubr.msk.f32.gmra.mxu0 %vm335_vm0, %v307_v42 }
  0x5f   : > { %502 = vmatprep.mubr.f32.mxu0 %v1571_v8 }
  0x62   : > { %1281 = vmatmul.mubr.msk.f32.gmra.mxu0 %vm335_vm0, %v308_v43 }
  0x63   : > { %508 = vmatprep.mubr.f32.mxu0 %v1571_v8 }
  0x66   : > { %1282 = vmatmul.mubr.msk.f32.gmra.mxu0 %vm335_vm0, %v309_v44 }
  0x67   : > { %514 = vmatprep.mubr.f32.mxu0 %v1571_v8 }
  0x6a   : > { %1283 = vmatmul.mubr.msk.f32.gmra.mxu0 %vm335_vm0, %v310_v45 }
  0x6b   : > { %520 = vmatprep.mubr.f32.mxu0 %v1571_v8 }
  0x6e   : > { %1284 = vmatmul.mubr.msk.f32.gmra.mxu0 %vm335_vm0, %v311_v46 }
  0x6f   : > { %526 = vmatprep.mubr.f32.mxu0 %v1571_v8 }
  0x72   : > { %1285 = vmatmul.mubr.msk.f32.gmra.mxu0 %vm335_vm0, %v312_v47 }
  0x73   : > { %532 = vmatprep.mubr.f32.mxu0 %v1571_v8 }
  0x76   : > { %1286 = vmatmul.mubr.msk.f32.gmra.mxu0 %vm335_vm0, %v313_v48 }
  0x77   : > { %538 = vmatprep.mubr.f32.mxu0 %v1571_v8 }
  0x7a   : > { %1287 = vmatmul.mubr.msk.f32.gmra.mxu0 %vm335_vm0, %v314_v49 }
  0xb1   : > { %v590_v61 = vpop.permute.xlu1 %589 }
  0xb2   : > { %v580_v60 = vpop.permute.xlu0 %579 }
  0xb5   : > { %v595_v2 = vpop.permute.xlu1 %594 }
  0xb6   : > { %v585_v1 = vpop.permute.xlu0 %584 }
  0xb9   : > { %v605_v7 = vpop.permute.xlu1 %604 }
  0xba   : > { %v600_v5 = vpop.permute.xlu0 %599 }
  0xbd   : > { %v615_v13 = vpop.permute.xlu1 %614 }
  0xbe   : > { %v610_v11 = vpop.permute.xlu0 %609 }
  0xc1   : > { %v625_v30 = vpop.permute.xlu1 %624 }
  0xc2   : > { %v620_v22 = vpop.permute.xlu0 %619 }
  0xc6   : > { %v630_v48 = vpop.permute.xlu0 %629 }
  0xfe   : > { %v450_v50 = vpop.f32.mrf.mxu0 }
  0xff   : > { %v545_v18 = vmul.f32 2.0, %v450_v50 }
 0x100   : > { %v452_v51 = vpop.f32.mrf.mxu0 }
 0x101   : > { %v546_v24 = vmul.f32 2.0, %v452_v51  ;;  %v1834_v35 = vsub.f32 %v580_v60, %v545_v18 }
 0x102   : > { %v456_v52 = vpop.f32.mrf.mxu0 }
 0x103   : > { %v547_v26 = vmul.f32 2.0, %v456_v52  ;;  %v1842_v40 = vsub.f32 %v580_v60, %v546_v24 }
 0x104   : > { %v458_v53 = vpop.f32.mrf.mxu0 }
 0x105   : > { %v548_v27 = vmul.f32 2.0, %v458_v53  ;;  %v1846_v44 = vsub.f32 %v585_v1, %v547_v26 }
 0x106   : > { %v462_v54 = vpop.f32.mrf.mxu0 }
 0x107   : > { %v549_v15 = vmul.f32 2.0, %v462_v54  ;;  %v1848_v45 = vsub.f32 %v585_v1, %v548_v27 }
 0x108   : > { %v464_v55 = vpop.f32.mrf.mxu0 }
 0x109   : > { %v550_v17 = vmul.f32 2.0, %v464_v55  ;;  %v1830_v28 = vsub.f32 %v590_v61, %v549_v15  ;;  %v640_v15 = vpop.permute.xlu0 %639 }
 0x10a   : > { %v468_v56 = vpop.f32.mrf.mxu0 }
 0x10b   : > { %v551_v19 = vmul.f32 2.0, %v468_v56  ;;  %v1832_v32 = vsub.f32 %v590_v61, %v550_v17  ;;  %v706_v46 = vmin.f32 %v1834_v35, %v1830_v28 }
 0x10c   : > { %v470_v57 = vpop.f32.mrf.mxu0 }
 0x10d   : > { %v552_v20 = vmul.f32 2.0, %v470_v57  ;;  %v1836_v36 = vsub.f32 %v595_v2, %v551_v19  ;;  %v727_v50 = vmin.f32 %v1842_v40, %v1832_v32  ;;  %v635_v57 = vpop.permute.xlu1 %634 }
 0x10e   : > { %v474_v58 = vpop.f32.mrf.mxu0 }
 0x10f   : > { %v553_v21 = vmul.f32 2.0, %v474_v58  ;;  %v1838_v37 = vsub.f32 %v595_v2, %v552_v20  ;;  %v707_v54 = vmin.f32 %v1846_v44, %v1836_v36 }
 0x110   : > { %v476_v59 = vpop.f32.mrf.mxu0 }
 0x111   : > { %v554_v25 = vmul.f32 2.0, %v476_v59  ;;  %v1840_v38 = vsub.f32 %v600_v5, %v553_v21  ;;  %v728_v55 = vmin.f32 %v1848_v45, %v1838_v37  ;;  %v645_v21 = vpop.permute.xlu1 %644 }
 0x112   : > { %v480_v62 = vpop.f32.mrf.mxu0 }
 0x113   : > { %v555_v29 = vmul.f32 2.0, %v480_v62  ;;  %v1844_v41 = vsub.f32 %v600_v5, %v554_v25  ;;  %v708_v56 = vmin.f32 %v706_v46, %v1840_v38 }
 0x114   : > { %v482_v63 = vpop.f32.mrf.mxu0 }
 0x115   : > { %v556_v33 = vmul.f32 2.0, %v482_v63  ;;  %v1852_v47 = vsub.f32 %v605_v7, %v555_v29  ;;  %v729_v60 = vmin.f32 %v727_v50, %v1844_v41 }
 0x116   : > { %v486_v0 = vpop.f32.mrf.mxu0 }
 0x117   : > { %v557_v34 = vmul.f32 2.0, %v486_v0  ;;  %v1856_v51 = vsub.f32 %v605_v7, %v556_v33  ;;  %v709_v0 = vmin.f32 %v707_v54, %v1852_v47 }
 0x118   : > { %v488_v3 = vpop.f32.mrf.mxu0 }
 0x119   : > { %v558_v42 = vmul.f32 2.0, %v488_v3  ;;  %v1858_v52 = vsub.f32 %v610_v11, %v557_v34  ;;  %v730_v5 = vmin.f32 %v728_v55, %v1856_v51 }
 0x11a   : > { %v492_v4 = vpop.f32.mrf.mxu0 }
 0x11b   : > { %v559_v43 = vmul.f32 2.0, %v492_v4  ;;  %v1866_v61 = vsub.f32 %v610_v11, %v558_v42 }
 0x11c   : > { %v494_v6 = vpop.f32.mrf.mxu0 }
 0x11d   : > { %v560_v53 = vmul.f32 2.0, %v494_v6  ;;  %v1868_v62 = vsub.f32 %v615_v13, %v559_v43  ;;  %v710_v6 = vmin.f32 %v708_v56, %v1858_v52  ;;  %v731_v20 = vmin.f32 %v729_v60, %v1866_v61 }
 0x11e   : > { %v498_v9 = vpop.f32.mrf.mxu0 }
 0x11f   : > { %v561_v58 = vmul.f32 2.0, %v498_v9  ;;  %v1873_v7 = vsub.f32 %v615_v13, %v560_v53  ;;  %v650_v53 = vpop.permute.xlu0 %649 }
 0x120   : > { %v500_v10 = vpop.f32.mrf.mxu0 }
 0x121   : > { %v562_v1 = vmul.f32 2.0, %v500_v10  ;;  %v1875_v17 = vsub.f32 %v620_v22, %v561_v58  ;;  %v711_v10 = vmin.f32 %v709_v0, %v1868_v62 }
 0x122   : > { %v504_v12 = vpop.f32.mrf.mxu0 }
 0x123   : > { %v563_v63 = vmul.f32 2.0, %v504_v12  ;;  %v1881_v24 = vsub.f32 %v620_v22, %v562_v1  ;;  %v712_v34 = vmin.f32 %v710_v6, %v1875_v17 }
 0x124   : > { %v506_v14 = vpop.f32.mrf.mxu0 }
 0x125   : > { %v564_v2 = vmul.f32 2.0, %v506_v14  ;;  %v1879_v14 = vsub.f32 %v625_v30, %v563_v63  ;;  %v733_v50 = vmin.f32 %v731_v20, %v1881_v24  ;;  %v655_v63 = vpop.permute.xlu1 %654 }
 0x126   : > { %v510_v16 = vpop.f32.mrf.mxu0 }
 0x127   : > { %v565_v3 = vmul.f32 2.0, %v510_v16  ;;  %v1883_v13 = vsub.f32 %v625_v30, %v564_v2  ;;  %v713_v43 = vmin.f32 %v711_v10, %v1879_v14 }
 0x128   : > { %v512_v23 = vpop.f32.mrf.mxu0 }
 0x129   : > { %v566_v11 = vmul.f32 2.0, %v512_v23  ;;  %v1885_v25 = vsub.f32 %v630_v48, %v565_v3  ;;  %v732_v23 = vmin.f32 %v730_v5, %v1873_v7 }
 0x12a   : > { %v516_v31 = vpop.f32.mrf.mxu0 }
 0x12b   : > { %v567_v9 = vmul.f32 2.0, %v516_v31  ;;  %v734_v54 = vmin.f32 %v732_v23, %v1883_v13  ;;  %v714_v55 = vmin.f32 %v712_v34, %v1885_v25 }
 0x12c   : > { %v518_v39 = vpop.f32.mrf.mxu0 }
 0x12d   : > { %v568_v18 = vmul.f32 2.0, %v518_v39  ;;  %v1888_v29 = vsub.f32 %v635_v57, %v567_v9  ;;  %v1891_v39 = vsub.f32 %v630_v48, %v566_v11 }
 0x12e   : > { %v522_v49 = vpop.f32.mrf.mxu0 }
 0x12f   : > { %v569_v19 = vmul.f32 2.0, %v522_v49  ;;  %v1893_v42 = vsub.f32 %v635_v57, %v568_v18  ;;  %v715_v57 = vmin.f32 %v713_v43, %v1888_v29  ;;  %v735_v0 = vmin.f32 %v733_v50, %v1891_v39 }
 0x130   : > { %v524_v59 = vpop.f32.mrf.mxu0 }
 0x131   : > { %v570_v26 = vmul.f32 2.0, %v524_v59  ;;  %v1895_v22 = vsub.f32 %v640_v15, %v569_v19  ;;  %v736_v1 = vmin.f32 %v734_v54, %v1893_v42 }
 0x132   : > { %v528_v4 = vpop.f32.mrf.mxu0 }
 0x133   : > { %v571_v16 = vmul.f32 2.0, %v528_v4  ;;  %v1903_v56 = vsub.f32 %v640_v15, %v570_v26  ;;  %v716_v2 = vmin.f32 %v714_v55, %v1895_v22 }
 0x134   : > { %v530_v12 = vpop.f32.mrf.mxu0 }
 0x135   : > { %v572_v31 = vmul.f32 2.0, %v530_v12  ;;  %v1898_v46 = vsub.f32 %v645_v21, %v571_v16  ;;  %v737_v15 = vmin.f32 %v735_v0, %v1903_v56 }
 0x136   : > { %v534_v27 = vpop.f32.mrf.mxu0 }
 0x137   : > { %v573_v33 = vmul.f32 2.0, %v534_v27  ;;  %v1906_v58 = vsub.f32 %v645_v21, %v572_v31  ;;  %v717_v4 = vmin.f32 %v715_v57, %v1898_v46  ;;  %v689_v31 = vlaneseq }
 0x138   : > { %v536_v30 = vpop.f32.mrf.mxu0 }
 0x139   : > { %v574_v49 = vmul.f32 2.0, %v536_v30  ;;  %v1908_v59 = vsub.f32 %v650_v53, %v573_v33  ;;  %v738_v11 = vmin.f32 %v736_v1, %v1906_v58  ;;  %v1927_v43 = vshrl.u32 %v689_v31, 7 }
 0x13a   : > { %v540_v48 = vpop.f32.mrf.mxu0 }
 0x13b   : > { %v575_v60 = vmul.f32 2.0, %v540_v48  ;;  %v1914_v5 = vsub.f32 %v650_v53, %v574_v49  ;;  %v718_v18 = vmin.f32 %v716_v2, %v1908_v59  ;;  %v1932_v54 = vadd.s32 8, %v1927_v43 }
 0x13c   : > { %v542_v3 = vpop.f32.mrf.mxu0  ;;  %v1935_v55 = vadd.s32 16, %v1927_v43  ;;  %v1938_v48 = vadd.s32 24, %v1927_v43  ;;  %v1941_v57 = vadd.s32 32, %v1927_v43  ;;  %v1958_v0 = vadd.s32 56, %v1927_v43 }
 0x13d   : > { %v1916_v6 = vsub.f32 %v655_v63, %v575_v60  ;;  %v576_v9 = vmul.f32 2.0, %v542_v3  ;;  %v739_v20 = vmin.f32 %v737_v15, %v1914_v5  ;;  %v1944_v60 = vadd.s32 40, %v1927_v43 }
 0x13e   : > { %v1961_v1 = vadd.s32 64, %v1927_v43  ;;  %v1964_v2 = vadd.s32 72, %v1927_v43 }
 0x13f   : > { %v719_v19 = vmin.f32 %v717_v4, %v1916_v6  ;;  %v1922_v12 = vsub.f32 %v655_v63, %v576_v9  ;;  %v1947_v63 = vadd.s32 48, %v1927_v43 }
 0x141   : > { %v720_v10 = vmin.f32 %v718_v18, %v719_v19  ;;  %v740_v16 = vmin.f32 %v738_v11, %v1922_v12  ;;  %v1983_v18 = vadd.s32 112, %v1927_v43  ;;  %v1986_v19 = vadd.s32 120, %v1927_v43 }
 0x143   : > { %v721_v21 = vrot.slane %v720_v10, 4  ;;  %v741_v26 = vmin.f32 %v739_v20, %v740_v16 }
 0x145   : > { %v722_v27 = vmin.f32 %v720_v10, %v721_v21  ;;  %v742_v23 = vrot.slane %v741_v26, 4 }
 0x147   : > { %v723_v33 = vrot.slane %v722_v27, 2  ;;  %v743_v30 = vmin.f32 %v741_v26, %v742_v23 }
 0x149   : > { %v724_v34 = vmin.f32 %v722_v27, %v723_v33  ;;  %v744_v53 = vrot.slane %v743_v30, 2 }
 0x14b   : > { %v725_v49 = vrot.slane %v724_v34, 1  ;;  %v745_v3 = vmin.f32 %v743_v30, %v744_v53 }
 0x14d   : > { %v1929_v50 = vmin.f32 %v724_v34, %v725_v49  ;;  %v746_v20 = vrot.slane %v745_v3, 1 }
 0x14f   : > { %vm748_vm1 = vcmp.eq.f32.partialorder %v1834_v35, %v1929_v50  ;;  %vm750_vm2 = vcmp.eq.f32.partialorder %v1846_v44, %v1929_v50  ;;  %vm752_vm3 = vcmp.eq.f32.partialorder %v1830_v28, %v1929_v50  ;;  %vm754_vm4 = vcmp.eq.f32.partialorder %v1836_v36, %v1929_v50 }
 0x150   : > { %v1967_v35 = vadd.s32 80, %v1927_v43  ;;  %v1970_v44 = vadd.s32 88, %v1927_v43  ;;  %v1973_v28 = vadd.s32 96, %v1927_v43  ;;  %v1976_v36 = vadd.s32 104, %v1927_v43 }
 0x151   : > { %v780_v4 = vsel %vm748_vm1, %v1927_v43, 128  ;;  %v782_v9 = vsel %vm750_vm2, %v1932_v54, 128  ;;  %v784_v15 = vsel %vm752_vm3, %v1935_v55, 128  ;;  %v786_v11 = vsel %vm754_vm4, %v1938_v48, 128 }
 0x152   : > { %vm756_vm5 = vcmp.eq.f32.partialorder %v1840_v38, %v1929_v50  ;;  %vm758_vm6 = vcmp.eq.f32.partialorder %v1852_v47, %v1929_v50  ;;  %vm760_vm7 = vcmp.eq.f32.partialorder %v1858_v52, %v1929_v50  ;;  %vm762_vm8 = vcmp.eq.f32.partialorder %v1868_v62, %v1929_v50 }
 0x153   : > { %vm764_vm9 = vcmp.eq.f32.partialorder %v1875_v17, %v1929_v50  ;;  %vm766_vm10 = vcmp.eq.f32.partialorder %v1879_v14, %v1929_v50  ;;  %vm768_vm11 = vcmp.eq.f32.partialorder %v1885_v25, %v1929_v50  ;;  %vm812_vm12 = vcmp.lt.s32.totalorder %v780_v4, %v784_v15 }
 0x154   : > { %vm814_vm13 = vcmp.lt.s32.totalorder %v782_v9, %v786_v11  ;;  %v788_v38 = vsel %vm756_vm5, %v1941_v57, 128  ;;  %v790_v47 = vsel %vm758_vm6, %v1944_v60, 128  ;;  %v813_v10 = vsel %vm812_vm12, %v780_v4, %v784_v15 }
 0x155   : > { %v815_v16 = vsel %vm814_vm13, %v782_v9, %v786_v11  ;;  %vm770_vm14 = vcmp.eq.f32.partialorder %v1888_v29, %v1929_v50  ;;  %vm772_vm15 = vcmp.eq.f32.partialorder %v1895_v22, %v1929_v50  ;;  %vm816_vm0 = vcmp.lt.s32.totalorder %v813_v10, %v788_v38 }
 0x156   : > { %vm818_vm1 = vcmp.lt.s32.totalorder %v815_v16, %v790_v47  ;;  %v792_v21 = vsel %vm760_vm7, %v1947_v63, 128  ;;  %v794_v26 = vsel %vm762_vm8, %v1958_v0, 128  ;;  %v817_v27 = vsel %vm816_vm0, %v813_v10, %v788_v38 }
 0x157   : > { %v819_v23 = vsel %vm818_vm1, %v815_v16, %v790_v47  ;;  %vm774_vm2 = vcmp.eq.f32.partialorder %v1898_v46, %v1929_v50  ;;  %vm776_vm3 = vcmp.eq.f32.partialorder %v1908_v59, %v1929_v50  ;;  %vm820_vm4 = vcmp.lt.s32.totalorder %v817_v27, %v792_v21 }
 0x158   : > { %vm822_vm5 = vcmp.lt.s32.totalorder %v819_v23, %v794_v26  ;;  %v796_v52 = vsel %vm764_vm9, %v1961_v1, 128  ;;  %v798_v62 = vsel %vm766_vm10, %v1964_v2, 128  ;;  %v821_v33 = vsel %vm820_vm4, %v817_v27, %v792_v21 }
 0x159   : > { %v823_v34 = vsel %vm822_vm5, %v819_v23, %v794_v26  ;;  %vm778_vm6 = vcmp.eq.f32.partialorder %v1916_v6, %v1929_v50  ;;  %vm824_vm7 = vcmp.lt.s32.totalorder %v821_v33, %v796_v52  ;;  %v2030_v30 = vmin.f32 %v745_v3, %v746_v20 }
 0x15a   : > { %vm826_vm8 = vcmp.lt.s32.totalorder %v823_v34, %v798_v62  ;;  %v800_v17 = vsel %vm768_vm11, %v1967_v35, 128  ;;  %v802_v14 = vsel %vm770_vm14, %v1970_v44, 128  ;;  %v825_v49 = vsel %vm824_vm7, %v821_v33, %v796_v52 }
 0x15b   : > { %v827_v53 = vsel %vm826_vm8, %v823_v34, %v798_v62  ;;  %v804_v6 = vsel %vm772_vm15, %v1973_v28, 128  ;;  %v806_v3 = vsel %vm774_vm2, %v1976_v36, 128  ;;  %vm828_vm9 = vcmp.lt.s32.totalorder %v825_v49, %v800_v17 }
 0x15c   : > { %vm830_vm10 = vcmp.lt.s32.totalorder %v827_v53, %v802_v14  ;;  %v808_v25 = vsel %vm776_vm3, %v1983_v18, 128  ;;  %v810_v29 = vsel %vm778_vm6, %v1986_v19, 128  ;;  %v829_v4 = vsel %vm828_vm9, %v825_v49, %v800_v17 }
 0x15d   : > { %v831_v9 = vsel %vm830_vm10, %v827_v53, %v802_v14  ;;  %vm832_vm11 = vcmp.lt.s32.totalorder %v829_v4, %v804_v6  ;;  %vm749_vm13 = vcmp.eq.f32.partialorder %v1842_v40, %v2030_v30  ;;  %vm753_vm14 = vcmp.eq.f32.partialorder %v1832_v32, %v2030_v30 }
 0x15e   : > { %vm834_vm12 = vcmp.lt.s32.totalorder %v831_v9, %v806_v3  ;;  %v833_v22 = vsel %vm832_vm11, %v829_v4, %v804_v6  ;;  %vm751_vm15 = vcmp.eq.f32.partialorder %v1848_v45, %v2030_v30  ;;  %vm755_vm0 = vcmp.eq.f32.partialorder %v1838_v37, %v2030_v30 }
 0x15f   : > { %v835_v46 = vsel %vm834_vm12, %v831_v9, %v806_v3  ;;  %vm836_vm1 = vcmp.lt.s32.totalorder %v833_v22, %v808_v25  ;;  %v781_v15 = vsel %vm749_vm13, %v1927_v43, 128  ;;  %v785_v11 = vsel %vm753_vm14, %v1935_v55, 128 }
 0x160   : > { %vm838_vm2 = vcmp.lt.s32.totalorder %v835_v46, %v810_v29  ;;  %v837_v59 = vsel %vm836_vm1, %v833_v22, %v808_v25  ;;  %vm757_vm4 = vcmp.eq.f32.partialorder %v1844_v41, %v2030_v30  ;;  %v783_v32 = vsel %vm751_vm15, %v1932_v54, 128 }
 0x161   : > { %v839_v50 = vsel %vm838_vm2, %v835_v46, %v810_v29  ;;  %v787_v40 = vsel %vm755_vm0, %v1938_v48, 128  ;;  %vm759_vm5 = vcmp.eq.f32.partialorder %v1856_v51, %v2030_v30  ;;  %vm761_vm6 = vcmp.eq.f32.partialorder %v1866_v61, %v2030_v30 }
 0x162   : > { %vm840_vm3 = vcmp.lt.s32.totalorder %v837_v59, %v839_v50  ;;  %vm763_vm7 = vcmp.eq.f32.partialorder %v1873_v7, %v2030_v30  ;;  %vm765_vm8 = vcmp.eq.f32.partialorder %v1881_v24, %v2030_v30  ;;  %vm851_vm9 = vcmp.lt.s32.totalorder %v781_v15, %v785_v11 }
 0x163   : > { %v841_v45 = vsel %vm840_vm3, %v837_v59, %v839_v50  ;;  %vm767_vm10 = vcmp.eq.f32.partialorder %v1883_v13, %v2030_v30  ;;  %v789_v41 = vsel %vm757_vm4, %v1941_v57, 128  ;;  %v852_v20 = vsel %vm851_vm9, %v781_v15, %v785_v11 }
 0x164   : > { %v842_v37 = vrot.slane %v841_v45, 4  ;;  %vm853_vm11 = vcmp.lt.s32.totalorder %v783_v32, %v787_v40  ;;  %vm769_vm12 = vcmp.eq.f32.partialorder %v1891_v39, %v2030_v30  ;;  %v791_v51 = vsel %vm759_vm5, %v1944_v60, 128 }
 0x165   : > { %v854_v61 = vsel %vm853_vm11, %v783_v32, %v787_v40  ;;  %vm855_vm13 = vcmp.lt.s32.totalorder %v852_v20, %v789_v41  ;;  %vm771_vm14 = vcmp.eq.f32.partialorder %v1893_v42, %v2030_v30  ;;  %v793_v38 = vsel %vm761_vm6, %v1947_v63, 128 }
 0x166   : > { %v856_v47 = vsel %vm855_vm13, %v852_v20, %v789_v41  ;;  %vm857_vm15 = vcmp.lt.s32.totalorder %v854_v61, %v791_v51  ;;  %vm843_vm0 = vcmp.lt.s32.totalorder %v841_v45, %v842_v37  ;;  %v795_v10 = vsel %vm763_vm7, %v1958_v0, 128 }
 0x167   : > { %v858_v16 = vsel %vm857_vm15, %v854_v61, %v791_v51  ;;  %vm859_vm1 = vcmp.lt.s32.totalorder %v856_v47, %v793_v38  ;;  %vm773_vm2 = vcmp.eq.f32.partialorder %v1903_v56, %v2030_v30  ;;  %v797_v21 = vsel %vm765_vm8, %v1961_v1, 128 }
 0x168   : > { %v860_v26 = vsel %vm859_vm1, %v856_v47, %v793_v38  ;;  %vm861_vm3 = vcmp.lt.s32.totalorder %v858_v16, %v795_v10  ;;  %vm775_vm4 = vcmp.eq.f32.partialorder %v1906_v58, %v2030_v30  ;;  %v799_v7 = vsel %vm767_vm10, %v1964_v2, 128 }
 0x169   : > { %v862_v27 = vsel %vm861_vm3, %v858_v16, %v795_v10  ;;  %vm863_vm5 = vcmp.lt.s32.totalorder %v860_v26, %v797_v21  ;;  %v844_v23 = vsel %vm843_vm0, %v841_v45, %v842_v37  ;;  %v801_v52 = vsel %vm769_vm12, %v1967_v35, 128 }
 0x16a   : > { %v864_v24 = vsel %vm863_vm5, %v860_v26, %v797_v21  ;;  %vm865_vm6 = vcmp.lt.s32.totalorder %v862_v27, %v799_v7  ;;  %vm777_vm7 = vcmp.eq.f32.partialorder %v1914_v5, %v2030_v30  ;;  %v803_v62 = vsel %vm771_vm14, %v1970_v44, 128 }
 0x16b   : > { %v866_v13 = vsel %vm865_vm6, %v862_v27, %v799_v7  ;;  %vm867_vm8 = vcmp.lt.s32.totalorder %v864_v24, %v801_v52  ;;  %vm779_vm9 = vcmp.eq.f32.partialorder %v1922_v12, %v2030_v30  ;;  %v805_v39 = vsel %vm773_vm2, %v1973_v28, 128 }
 0x16c   : > { %v868_v33 = vsel %vm867_vm8, %v864_v24, %v801_v52  ;;  %vm869_vm10 = vcmp.lt.s32.totalorder %v866_v13, %v803_v62  ;;  %v845_v34 = vrot.slane %v844_v23, 2  ;;  %v807_v5 = vsel %vm775_vm4, %v1976_v36, 128 }
 0x16d   : > { %v870_v42 = vsel %vm869_vm10, %v866_v13, %v803_v62  ;;  %vm871_vm11 = vcmp.lt.s32.totalorder %v868_v33, %v805_v39  ;;  %v809_v17 = vsel %vm777_vm7, %v1983_v18, 128  ;;  %v811_v12 = vsel %vm779_vm9, %v1986_v19, 128 }
 0x16e   : > { %v872_v14 = vsel %vm871_vm11, %v868_v33, %v805_v39  ;;  %vm873_vm12 = vcmp.lt.s32.totalorder %v870_v42, %v807_v5  ;;  %vm846_vm15 = vcmp.lt.s32.totalorder %v844_v23, %v845_v34  ;;  %v1573_v4 = vmov 1966171168  }
 0x16f   : > { %v874_v49 = vsel %vm873_vm12, %v870_v42, %v807_v5  ;;  %vm875_vm13 = vcmp.lt.s32.totalorder %v872_v14, %v809_v17  ;;  %v847_v3 = vsel %vm846_vm15, %v844_v23, %v845_v34  ;;  %v1085_v9 = vunpack.c.l.s4 %v1573_v4 }
 0x170   : > { %v876_v56 = vsel %vm875_vm13, %v872_v14, %v809_v17  ;;  %vm877_vm14 = vcmp.lt.s32.totalorder %v874_v49, %v811_v12  ;;  %v848_v58 = vrot.slane %v847_v3, 1  ;;  %v1574_v11 = vmov 1.0  }
 0x171   : > { %v878_v53 = vsel %vm877_vm14, %v874_v49, %v811_v12  ;;  %v1086_v50 = vunpack.c.0.s8 %v1085_v9  ;;  %vm1100_vm13 = vcmp.lt.s32.totalorder %v689_v31, 256  ;;  %v315_v31 = vld [vmem:[%s2344_s2] sm:$0xff] }
 0x172   : > { %vm879_vm0 = vcmp.lt.s32.totalorder %v876_v56, %v878_v53  ;;  %vm849_vm3 = vcmp.lt.s32.totalorder %v847_v3, %v848_v58 }
 0x173   : > { %v880_v6 = vsel %vm879_vm0, %v876_v56, %v878_v53  ;;  %v2122_v59 = vsel %vm849_vm3, %v847_v3, %v848_v58  ;;  %v1089_v32 = vsub.s32 %v1086_v50, %v1927_v43 }
 0x174   : > { %v881_v25 = vrot.slane %v880_v6, 4  ;;  %vm920_vm6 = vcmp.eq.s32.totalorder %v1986_v19, %v2122_v59  ;;  %vm918_vm8 = vcmp.eq.s32.totalorder %v1983_v18, %v2122_v59  ;;  %vm916_vm10 = vcmp.eq.s32.totalorder %v1976_v36, %v2122_v59 }
 0x175   : > { %vm914_vm12 = vcmp.eq.s32.totalorder %v1973_v28, %v2122_v59  ;;  %vm912_vm15 = vcmp.eq.s32.totalorder %v1970_v44, %v2122_v59  ;;  %vm908_vm3 = vcmp.eq.s32.totalorder %v1964_v2, %v2122_v59 }
 0x176   : > { %vm882_vm1 = vcmp.lt.s32.totalorder %v880_v6, %v881_v25 }
 0x177   : > { %v883_v30 = vsel %vm882_vm1, %v880_v6, %v881_v25  ;;  %vm910_vm1 = vcmp.eq.s32.totalorder %v1967_v35, %v2122_v59 }
 0x178   : > { %v884_v29 = vrot.slane %v883_v30, 2 }
 0x17a   : > { %vm885_vm2 = vcmp.lt.s32.totalorder %v883_v30, %v884_v29 }
 0x17b   : > { %v886_v22 = vsel %vm885_vm2, %v883_v30, %v884_v29 }
 0x17c   : > { %v887_v46 = vrot.slane %v886_v22, 1 }
 0x17e   : > { %vm888_vm4 = vcmp.lt.s32.totalorder %v886_v22, %v887_v46 }
 0x17f   : > { %v2124_v15 = vsel %vm888_vm4, %v886_v22, %v887_v46 }
 0x180   : > { %vm921_vm5 = vcmp.eq.s32.totalorder %v1986_v19, %v2124_v15  ;;  %vm919_vm7 = vcmp.eq.s32.totalorder %v1983_v18, %v2124_v15  ;;  %vm917_vm9 = vcmp.eq.s32.totalorder %v1976_v36, %v2124_v15  ;;  %v1083_v19 = vcombine.low %v2122_v59, %v2124_v15 }
 0x181   : > { %1320 = vmatprep.subr.msk.mxu1 %vm921_vm5, %v1574_v11  ;;  %vm915_vm11 = vcmp.eq.s32.totalorder %v1973_v28, %v2124_v15  ;;  %vm913_vm14 = vcmp.eq.s32.totalorder %v1970_v44, %v2124_v15  ;;  %vm911_vm0 = vcmp.eq.s32.totalorder %v1967_v35, %v2124_v15  ;;  %vm909_vm2 = vcmp.eq.s32.totalorder %v1964_v2, %v2124_v15 }
 0x182   : > { %1321 = vmatpush1.msk.msra.mxu1 %vm920_vm6, %v1574_v11  ;;  %v1090_v18 = vrot.slane %v1083_v19, %v1089_v32  ;;  %vm907_vm4 = vcmp.eq.s32.totalorder %v1961_v1, %v2124_v15  ;;  %vm906_vm5 = vcmp.eq.s32.totalorder %v1961_v1, %v2122_v59  ;;  %vm905_vm6 = vcmp.eq.s32.totalorder %v1958_v0, %v2124_v15 }
 0x183   : > { %1322 = vmatprep.subr.msk.mxu1 %vm919_vm7, %v1574_v11  ;;  %vm904_vm7 = vcmp.eq.s32.totalorder %v1958_v0, %v2122_v59 }
 0x184   : > { %1323 = vmatpush1.msk.msra.mxu1 %vm918_vm8, %v1574_v11  ;;  %v1097_v40 = vrot.slane %v1090_v18, %v1089_v32  ;;  %vm903_vm8 = vcmp.eq.s32.totalorder %v1947_v63, %v2124_v15 }
 0x185   : > { %1324 = vmatprep.subr.msk.mxu1 %vm917_vm9, %v1574_v11  ;;  %vm902_vm9 = vcmp.eq.s32.totalorder %v1947_v63, %v2122_v59 }
 0x186   : > { %1325 = vmatpush1.msk.msra.mxu1 %vm916_vm10, %v1574_v11  ;;  %1102 = vst.msk [vmem:[%s2163_s27] sm:$0x3] %vm1100_vm13, %v1097_v40  ;;  %vm901_vm10 = vcmp.eq.s32.totalorder %v1944_v60, %v2124_v15  ;;  %vm898_vm13 = vcmp.eq.s32.totalorder %v1941_v57, %v2122_v59 }
 0x187   : > { %1326 = vmatprep.subr.msk.mxu1 %vm915_vm11, %v1574_v11  ;;  %vm900_vm11 = vcmp.eq.s32.totalorder %v1944_v60, %v2122_v59 }
 0x188   : > { %1327 = vmatpush1.msk.msra.mxu1 %vm914_vm12, %v1574_v11  ;;  %vm899_vm12 = vcmp.eq.s32.totalorder %v1941_v57, %v2124_v15 }
 0x189   : > { %1328 = vmatprep.subr.msk.mxu1 %vm913_vm14, %v1574_v11  ;;  %vm897_vm14 = vcmp.eq.s32.totalorder %v1938_v48, %v2124_v15 }
 0x18a   : > { %1329 = vmatpush1.msk.msra.mxu1 %vm912_vm15, %v1574_v11  ;;  %vm896_vm15 = vcmp.eq.s32.totalorder %v1938_v48, %v2122_v59 }
 0x18b   : > { %1330 = vmatprep.subr.msk.mxu1 %vm911_vm0, %v1574_v11  ;;  %vm895_vm0 = vcmp.eq.s32.totalorder %v1935_v55, %v2124_v15 }
 0x18c   : > { %1331 = vmatpush1.msk.msra.mxu1 %vm910_vm1, %v1574_v11  ;;  %vm894_vm1 = vcmp.eq.s32.totalorder %v1935_v55, %v2122_v59  ;;  %v317_v55 = vld [vmem:[%s2344_s2 + $0x10] sm:$0xff] }
 0x18d   : > { %1332 = vmatprep.subr.msk.mxu1 %vm909_vm2, %v1574_v11  ;;  %vm893_vm2 = vcmp.eq.s32.totalorder %v1932_v54, %v2124_v15 }
 0x18e   : > { %1333 = vmatpush1.msk.msra.mxu1 %vm908_vm3, %v1574_v11  ;;  %vm892_vm3 = vcmp.eq.s32.totalorder %v1932_v54, %v2122_v59  ;;  %v316_v54 = vld [vmem:[%s2344_s2 + $0x8] sm:$0xff] }
 0x18f   : > { %1334 = vmatprep.subr.msk.mxu1 %vm907_vm4, %v1574_v11  ;;  %vm891_vm4 = vcmp.eq.s32.totalorder %v1927_v43, %v2124_v15 }
 0x190   : > { %1335 = vmatpush1.msk.msra.mxu1 %vm906_vm5, %v1574_v11  ;;  %vm890_vm5 = vcmp.eq.s32.totalorder %v1927_v43, %v2122_v59  ;;  %v318_v43 = vld [vmem:[%s2344_s2 + $0x18] sm:$0xff]  ;;  %s1453_s2 = scalar_lea.vmem %s1452_s17, 64 }
 0x191   : > { %1336 = vmatprep.subr.msk.mxu1 %vm905_vm6, %v1574_v11  ;;  %p1455_p5 = scmp.lt.s32.totalorder %s1453_s2, %s1447_s1 }
 0x192   : > { %1337 = vmatpush1.msk.msra.mxu1 %vm904_vm7, %v1574_v11 }
 0x193   : > { %1338 = vmatprep.subr.msk.mxu1 %vm903_vm8, %v1574_v11  ;;  %p1456_p6 = por %p1455_p5, %p1454_p4 }
 0x194   : > { %1339 = vmatpush1.msk.msra.mxu1 %vm902_vm9, %v1574_v11 }
 0x195   : > { %1340 = vmatprep.subr.msk.mxu1 %vm901_vm10, %v1574_v11  ;;  %p1457_p7 = pnand %p1456_p6, %p1450_p3 }
 0x196   : > { %1341 = vmatpush1.msk.msra.mxu1 %vm900_vm11, %v1574_v11 }
 0x197   : > { %1342 = vmatprep.subr.msk.mxu1 %vm899_vm12, %v1574_v11 }
 0x198   : > { %1343 = vmatpush1.msk.msra.mxu1 %vm898_vm13, %v1574_v11 }
 0x199   : > { %1344 = vmatprep.subr.msk.mxu1 %vm897_vm14, %v1574_v11 }
 0x19a   : > { %1345 = vmatpush1.msk.msra.mxu1 %vm896_vm15, %v1574_v11 }
 0x19b   : > { %1346 = vmatprep.subr.msk.mxu1 %vm895_vm0, %v1574_v11 }
 0x19c   : > { %1347 = vmatpush1.msk.msra.mxu1 %vm894_vm1, %v1574_v11 }
 0x19d   : > { %1348 = vmatprep.subr.msk.mxu1 %vm893_vm2, %v1574_v11 }
 0x19e   : > { %1349 = vmatpush1.msk.msra.mxu1 %vm892_vm3, %v1574_v11 }
 0x19f   : > { %1350 = vmatprep.subr.msk.mxu1 %vm891_vm4, %v1574_v11 }
 0x1a0   : > { %1351 = vmatpush1.msk.msra.mxu1 %vm890_vm5, %v1574_v11 }
 0x1a1   : > { %1051 = vmatmul.mubr.f32.vlgmr.msra.gmra.mxu1 %v315_v31 }
 0x1a2   : > { %1056 = vmatprep.mubr.f32.mxu1 %v1571_v8 }
 0x1a5   : > { %1057 = vmatmul.mubr.f32.gmra.mxu1 %v316_v54 }
 0x1a6   : > { %1062 = vmatprep.mubr.f32.mxu1 %v1571_v8 }
 0x1a9   : > { %1063 = vmatmul.mubr.f32.gmra.mxu1 %v317_v55 }
 0x1aa   : > { %1068 = vmatprep.mubr.f32.mxu1 %v1571_v8 }
 0x1ad   : > { %1069 = vmatmul.mubr.f32.gmra.mxu1 %v318_v43 }
 0x1ae   : > { %1460 = shalt.err (!%p1457_p7)
}
 0x1af   : > { %s1461_s27 = scalar_lea.hbm %s1141_s14, 32  ;;  %s1465_s30 = scalar_lea.hbm %s2334_s5, 128 }
 0x1b0   : > { %p1462_p10 = scmp.ne.s32.totalorder %s1141_s14, %s1461_s27  ;;  %p1466_p13 = scmp.lt.s32.totalorder %s1141_s14, %s2334_s5 }
 0x1b1   : > { %p1467_p0 = scmp.lt.s32.totalorder %s1465_s30, %s1461_s27 }
 0x1b2   : > { %p1463_p11 = pnand %p1462_p10, %p1670_p8 }
 0x1b3   : > { %p1468_p1 = por %p1467_p0, %p1466_p13 }
 0x1b4   : > { %p1464_p12 = pneg %p1463_p11 }
 0x1b6   : > { %p1469_p2 = pnand %p1468_p1, %p1464_p12 }
 0x1b8   : > { %1472 = shalt.err (!%p1469_p2)
}
 0x1b9   : > { %1363 = dma.vmem_to_hbm [thread:$0]  (%p1670_p8), %s1144_s10, 32, %s1141_s14, %s1109_s15  }
 0x1ba   : > { %s2345_s1 = sshll.u32 %s1696_s6, 6  ;;  %s1355_s16 = sshll.u32 %s1557_s22, 4 }
 0x1bb   : > { %s280_s2 = scalar_lea.vmem [#allocation3], %s2345_s1  ;;  %s1121_s17 = sadd.s32 %s1355_s16, %s1354_s26 }
 0x1bc   : > { %s1124_s27 = sshll.u32 %s280_s2, 4  ;;  %s1356_s10 = sshll.u32 %s1121_s17, 7  ;;  %s2271_s27 = int_to_ptr.vmem [resolvable:$true] %s1124_s27 }
 0x1bd   : > { %s2276_s15 = scalar_lea.hbm %s2333_s4, %s1356_s10  ;;  %s1104_s21 = scalar_lea.sflag [#allocation4], %s1696_s6 }
 0x1be   : > { %s1473_s26 = scalar_lea.vmem %s2271_s27, 1024  ;;  %s1576_s0 = smov [#allocation3]  }
 0x1bf   : > { %p1474_p3 = scmp.ne.s32.totalorder %s2271_s27, %s1473_s26  ;;  %s1477_s11 = sshll.u32 %s1576_s0, 4  ;;  %s1478_s11 = int_to_ptr.vmem [resolvable:$false] %s1477_s11 }
 0x1c0   : > { %s1479_s30 = scalar_lea.vmem %s1478_s11, 2048  ;;  %p1480_p6 = scmp.lt.s32.totalorder %s2271_s27, %s1478_s11 }
 0x1c1   : > { %p1475_p4 = pnand %p1474_p3, %p1670_p8  ;;  %p1481_p7 = scmp.lt.s32.totalorder %s1479_s30, %s1473_s26 }
 0x1c3   : > { %p1476_p5 = pneg %p1475_p4  ;;  %p1482_p10 = por %p1481_p7, %p1480_p6 }
 0x1c5   : > { %p1483_p11 = pnand %p1482_p10, %p1476_p5 }
 0x261   : > { %v1052_v8 = vpop.f32.mrf.mxu1 }
 0x262   : > { %1075 = vst [vmem:[%s280_s2] sm:$0xff] %v1052_v8 }
 0x263   : > { %v1054_v48 = vpop.f32.mrf.mxu1 }
 0x264   : > { %1076 = vst [vmem:[%s280_s2 + $0x8] sm:$0xff] %v1054_v48 }
 0x265   : > { %v1058_v57 = vpop.f32.mrf.mxu1 }
 0x266   : > { %1077 = vst [vmem:[%s280_s2 + $0x10] sm:$0xff] %v1058_v57 }
 0x267   : > { %v1060_v60 = vpop.f32.mrf.mxu1 }
 0x268   : > { %1078 = vst [vmem:[%s280_s2 + $0x18] sm:$0xff] %v1060_v60 }
 0x269   : > { %v1064_v63 = vpop.f32.mrf.mxu1 }
 0x26a   : > { %1079 = vst [vmem:[%s280_s2 + $0x20] sm:$0xff] %v1064_v63 }
 0x26b   : > { %v1066_v0 = vpop.f32.mrf.mxu1 }
 0x26c   : > { %1080 = vst [vmem:[%s280_s2 + $0x28] sm:$0xff] %v1066_v0 }
 0x26d   : > { %v1070_v1 = vpop.f32.mrf.mxu1 }
 0x26e   : > { %1081 = vst [vmem:[%s280_s2 + $0x30] sm:$0xff] %v1070_v1 }
 0x26f   : > { %v1072_v2 = vpop.f32.mrf.mxu1 }
 0x270   : > { %1082 = vst [vmem:[%s280_s2 + $0x38] sm:$0xff] %v1072_v2 }
 0x271   : > { %1486 = shalt.err (!%p1483_p11)
}
 0x272   : > { %s1487_s9 = scalar_lea.hbm %s2276_s15, 1024  ;;  %s1491_s2 = scalar_lea.hbm %s2333_s4, 4096 }
 0x273   : > { %p1488_p12 = scmp.ne.s32.totalorder %s2276_s15, %s1487_s9  ;;  %p1492_p1 = scmp.lt.s32.totalorder %s2276_s15, %s2333_s4 }
 0x274   : > { %p1493_p2 = scmp.lt.s32.totalorder %s1491_s2, %s1487_s9 }
 0x275   : > { %p1489_p13 = pnand %p1488_p12, %p1670_p8 }
 0x276   : > { %p1494_p3 = por %p1493_p2, %p1492_p1 }
 0x277   : > { %p1490_p0 = pneg %p1489_p13 }
 0x279   : > { %p1495_p4 = pnand %p1494_p3, %p1490_p0 }
 0x27b   : > { %1498 = shalt.err (!%p1495_p4)
}
 0x27c   : > { %s1577_s10 = smov 256   ;;  %s1578_s22 = smov 512  }
 0x27d   : > { %s1579_s14 = smov 16  }
 0x27e   : > { %1362 = dma.vmem_to_hbm [thread:$0]  (%p1670_p8), %s2271_s27, 1024, %s2276_s15, %s1104_s21, %s1577_s10, %s1578_s22, %s1579_s14  }
 0x27f PF: > { %p1373_p5 = scmp.ge.s32.totalorder %s1569_s25, 2  ;;  %s1155_s26 = sand.u32 1, %s1541_s18  }
 0x280   : > { %s1156_s0 = scalar_lea.sflag [#allocation4], %s1155_s26 }
 0x281   : > { %p1367_p6 = pnand %p1373_p5, %p1674_p9 }
 0x283   : > { %p1368_p7 = pneg %p1367_p6 }
 0x285   : > { %1532 = dma.done.wait (%p1368_p7), %s1156_s0, 1024  }
 0x286   : > { %1534 = vsyncadd (%p1368_p7), %s1156_s0, 4294966272  ;;  %s1165_s11 = scalar_lea.sflag [#allocation6], %s1155_s26 }
 0x287   : > { %1536 = dma.done.wait (%p1368_p7), %s1165_s11, 32  }
 0x288   : > { %1538 = vsyncadd (%p1368_p7), %s1165_s11, 4294967264  ;;  %s22_s25 = sadd.s32 1, %s1569_s25   ;;  %s2346_s18 = smov %s1545_s19 }
 0x289   : > { %p19_p10 = scmp.ge.s32.totalorder %s22_s25, 6   ;;  %s2347_s19 = smov %s1549_s20 }
 0x28a   : > { %s2348_s20 = smov %s1682_s12  ;;  %s2349_s21 = smov %s1561_s23 }
 0x28b   : > { %s2350_s22 = smov %s1565_s24  ;;  %s2351_s23 = smov %s2354_s28 }
 0x28c   : > { %s2352_s24 = smov %s2358_s29  ;;  %21 = sbr.rel (!%p19_p10) target bundleno = 11 (0xb), region = 116 }
 0x291   :  { %1170 = vsyncpa [#allocation4], 1 }
 0x292   :  { %1172 = vsyncpa [#allocation4 + $0x1], 1 }
 0x293   :  { %1173 = vsyncpa [#allocation6], 1 }
 0x294   :  { %1175 = vsyncpa [#allocation6 + $0x1], 1 }

</bundles_post_ra>
